<compile_context>
chip_gen: v7x
topology: tpu7x:2x2x1
jax: 0.10.0
libtpu: 0.0.40
codegen_flags: <defaults>
</compile_context>

<pallas_src>
import jax
import jax.numpy as jnp
from jax import lax
from jax.experimental import pallas as pl
from jax.experimental.pallas import tpu as pltpu

EPS = 1e-5  # torch layer_norm default


def residual_block(x, weight, bias2d):
    """Forward pass of ResidualBlock.

    x:       (B, H) f32
    weight:  (H, H) f32, torch (out_features, in_features) layout
    bias2d:  (1, H) f32 -- bias pre-reshaped once at parameter-setup time (zero-copy),
             keeping the per-call path to a single pallas_call.
    """
    B, H = x.shape
    inv_n = 1.0 / float(B * H)  # whole-tensor layer_norm normalizes over all B*H elements

    def kernel(x_ref, w_ref, b_ref, o_ref):
        xv = x_ref[...]                                # (B, H) f32
        wv = w_ref[...]                                # (H, H) f32, torch (out, in)
        bv = b_ref[...]                                # (1, H) f32

        # linear(x) = x @ W^T: contract the in-features axis of W directly on the MXU.
        lin = lax.dot_general(xv, wv, (((1,), (1,)), ((), ())),
                              preferred_element_type=jnp.float32)

        # residual add + tanh (tanh goes to the EUP).
        y = jnp.tanh(lin + bv + xv)

        # torch.nn.functional.layer_norm(y, y.shape): normalize over ALL elements, biased
        # variance, no affine.  Sublane-reduce y and y*y first, then one cross-lane reduce
        # over the stacked (2, H) partials.
        part = jnp.concatenate(
            [jnp.sum(y, axis=0, keepdims=True),
             jnp.sum(y * y, axis=0, keepdims=True)], axis=0)      # (2, H)
        sums = jnp.sum(part, axis=1, keepdims=True) * inv_n        # (2, 1): [mean; E[y^2]]
        mean = sums[0:1, :]                                        # (1, 1)
        var = sums[1:2, :] - mean * mean                           # (1, 1), biased
        o_ref[...] = (y - mean) * lax.rsqrt(var + EPS)

    return pl.pallas_call(
        kernel,
        out_shape=jax.ShapeDtypeStruct((B, H), jnp.float32),
        in_specs=[
            pl.BlockSpec(memory_space=pltpu.MemorySpace.VMEM),
            pl.BlockSpec(memory_space=pltpu.MemorySpace.VMEM),
            pl.BlockSpec(memory_space=pltpu.MemorySpace.VMEM),
        ],
        out_specs=pl.BlockSpec(memory_space=pltpu.MemorySpace.VMEM),
    )(x, weight, bias2d)


def residual_block_ref(x, weight, bias):
    """Pure-JAX reference matching the PyTorch module semantics."""
    y = jnp.tanh(x @ weight.T + bias + x)
    mean = jnp.mean(y)
    var = jnp.mean((y - mean) ** 2)
    return (y - mean) / jnp.sqrt(var + EPS)


if __name__ == "__main__":
    hidden_dim = 32
    batch = 8

    key = jax.random.PRNGKey(0)
    kx, kw, kb = jax.random.split(key, 3)

    # Deterministic params, mimicking torch.nn.Linear init: U(-1/sqrt(H), 1/sqrt(H))
    bound = 1.0 / jnp.sqrt(jnp.float32(hidden_dim))
    weight = jax.random.uniform(kw, (hidden_dim, hidden_dim), jnp.float32, -bound, bound)
    bias = jax.random.uniform(kb, (hidden_dim,), jnp.float32, -bound, bound)
    x = jax.random.normal(kx, (batch, hidden_dim), jnp.float32)

    # Parameter-setup-time prep (hoisted out of the per-call path): zero-copy bias reshape.
    bias2d = bias.reshape(1, hidden_dim)

    out = jax.block_until_ready(residual_block(x, weight, bias2d))

    ref = residual_block_ref(x, weight, bias)
    assert out.shape == (batch, hidden_dim)
    assert jnp.allclose(out, ref, atol=1e-4, rtol=1e-4), "mismatch vs pure-JAX reference"

    print("KERNEL_OK")
</pallas_src>

<mosaic_0001>
module attributes {stable_mosaic.version = 11 : i64} {
  func.func @kernel(%arg0: memref<8x32xf32, #tpu.memory_space<vmem>>, %arg1: memref<32x32xf32, #tpu.memory_space<vmem>>, %arg2: memref<1x32xf32, #tpu.memory_space<vmem>>, %arg3: memref<8x32xf32, #tpu.memory_space<vmem>>) attributes {dimension_semantics = [], scalar_prefetch = 0 : i64, scratch_operands = 0 : i64, tpu.core_type = #tpu.core_type<tc>} {
    %c0 = arith.constant 0 : index
    %c0_0 = arith.constant 0 : index
    %0 = vector.load %arg0[%c0, %c0_0] : memref<8x32xf32, #tpu.memory_space<vmem>>, vector<8x32xf32>
    %c0_1 = arith.constant 0 : index
    %c0_2 = arith.constant 0 : index
    %1 = vector.load %arg1[%c0_1, %c0_2] : memref<32x32xf32, #tpu.memory_space<vmem>>, vector<32x32xf32>
    %c0_3 = arith.constant 0 : index
    %c0_4 = arith.constant 0 : index
    %2 = vector.load %arg2[%c0_3, %c0_4] : memref<1x32xf32, #tpu.memory_space<vmem>>, vector<1x32xf32>
    %cst = arith.constant dense<0.000000e+00> : vector<8x32xf32>
    %3 = tpu.matmul %0, %1, %cst {dimension_numbers = #tpu.dot_dimension_numbers<[1], [1], [0], [0], [0, 0, 1, 0], [], []>} : vector<8x32xf32>, vector<32x32xf32>, vector<8x32xf32> -> vector<8x32xf32>
    %4 = vector.broadcast %2 : vector<1x32xf32> to vector<8x32xf32>
    %5 = arith.addf %3, %4 : vector<8x32xf32>
    %6 = arith.addf %5, %0 : vector<8x32xf32>
    %7 = math.tanh %6 : vector<8x32xf32>
    %cst_5 = arith.constant dense<0.000000e+00> : vector<32xf32>
    %8 = vector.multi_reduction <add>, %7, %cst_5 [0] : vector<8x32xf32> to vector<32xf32>
    %9 = vector.shape_cast %8 : vector<32xf32> to vector<1x32xf32>
    %10 = arith.mulf %7, %7 : vector<8x32xf32>
    %cst_6 = arith.constant dense<0.000000e+00> : vector<32xf32>
    %11 = vector.multi_reduction <add>, %10, %cst_6 [0] : vector<8x32xf32> to vector<32xf32>
    %12 = vector.shape_cast %11 : vector<32xf32> to vector<1x32xf32>
    %13 = tpu.concatenate %9, %12 in 0 : vector<1x32xf32>, vector<1x32xf32> -> vector<2x32xf32>
    %cst_7 = arith.constant dense<0.000000e+00> : vector<2xf32>
    %14 = vector.multi_reduction <add>, %13, %cst_7 [1] : vector<2x32xf32> to vector<2xf32>
    %15 = vector.shape_cast %14 : vector<2xf32> to vector<2x1xf32>
    %cst_8 = arith.constant 3.906250e-03 : f32
    %16 = vector.broadcast %cst_8 : f32 to vector<2x1xf32>
    %17 = arith.mulf %15, %16 : vector<2x1xf32>
    %18 = vector.extract_strided_slice %17 {offsets = [0, 0], sizes = [1, 1], strides = [1, 1]} : vector<2x1xf32> to vector<1x1xf32>
    %19 = vector.extract_strided_slice %17 {offsets = [1, 0], sizes = [1, 1], strides = [1, 1]} : vector<2x1xf32> to vector<1x1xf32>
    %20 = arith.mulf %18, %18 : vector<1x1xf32>
    %21 = arith.subf %19, %20 : vector<1x1xf32>
    %22 = vector.broadcast %18 : vector<1x1xf32> to vector<8x32xf32>
    %23 = arith.subf %7, %22 : vector<8x32xf32>
    %cst_9 = arith.constant 9.99999974E-6 : f32
    %24 = vector.broadcast %cst_9 : f32 to vector<1x1xf32>
    %25 = arith.addf %21, %24 : vector<1x1xf32>
    %26 = math.rsqrt %25 : vector<1x1xf32>
    %27 = vector.broadcast %26 : vector<1x1xf32> to vector<8x32xf32>
    %28 = arith.mulf %23, %27 : vector<8x32xf32>
    %c0_10 = arith.constant 0 : index
    %c0_11 = arith.constant 0 : index
    %29 = vector.load %arg3[%c0_10, %c0_11] : memref<8x32xf32, #tpu.memory_space<vmem>>, vector<8x32xf32>
    tpu.vector_store %arg3[%c0_10, %c0_11], %28 {strides = array<i32>} : memref<8x32xf32, #tpu.memory_space<vmem>>, vector<8x32xf32>,
    return
  }
}

</mosaic_0001>

<bundles_post_ra>
// kernel: tpu_custom_call.1
= control target key start
LH: loop header
LB: loop body
LE: loop exit
PB: predicated region body
PF: predicated region fallthrough
CT: control target
= control target key end

     0   :  { %8 = vsyncpa [#allocation3], 0  ;;  %s394_s0 = inlined_call_operand.hbm [shape: f32[8,32], index: 0, kind: input, shape index: {}]   ;;  %s395_s1 = inlined_call_operand.hbm [shape: f32[32,32], index: 1, kind: input, shape index: {}]   ;;  %s396_s2 = inlined_call_operand.vmem [shape: f32[1,32], index: 2, kind: input, shape index: {}]   ;;  %s397_s3 = inlined_call_operand.hbm [shape: f32[8,32], index: 3, kind: output, shape index: {}]  }
   0x1   :  { %9 = vsyncpa [#allocation6], 0 }
   0x2   :  { %10 = vsyncpa [#allocation4], 0  ;;  %s314_s12 = smov [#allocation2]   ;;  %s315_s14 = smov [#allocation5]  }
   0x3   :  { %s17_s13 = sshll.u32 %s314_s12, 4  ;;  %s26_s15 = sshll.u32 %s315_s14, 4  ;;  %s18_s13 = int_to_ptr.vmem [resolvable:$true] %s17_s13  ;;  %s342_s15 = int_to_ptr.vmem [resolvable:$true] %s26_s15 }
   0x4   :  { %s242_s18 = scalar_lea.hbm %s394_s0, 128 }
   0x5   :  { %p243_p0 = scmp.ne.s32.totalorder %s394_s0, %s242_s18  ;;  %p246_p1 = scmp.lt.u32.totalorder %s242_s18, %s394_s0 }
   0x7   :  { %p248_p2 = pnand %p246_p1, %p243_p0 }
   0x9   :  { %251 = shalt.err (!%p248_p2)
}
   0xa   :  { %s252_s23 = scalar_lea.vmem %s18_s13, 128  ;;  %p257_p4 = scmp.lt.s32.totalorder %s18_s13, %s18_s13 }
   0xb   :  { %p253_p3 = scmp.ne.s32.totalorder %s18_s13, %s252_s23  ;;  %p258_p5 = scmp.lt.s32.totalorder %s252_s23, %s252_s23 }
   0xd   :  { %p259_p6 = por %p258_p5, %p257_p4 }
   0xf   :  { %p260_p7 = pnand %p259_p6, %p253_p3 }
  0x11   :  { %263 = shalt.err (!%p260_p7)
}
  0x12   :  { %20 = dma.hbm_to_vmem [thread:$0]  %s394_s0, 128, %s18_s13, [#allocation3]  }
  0x13   :  { %s264_s28 = scalar_lea.hbm %s395_s1, 512 }
  0x14   :  { %p265_p8 = scmp.ne.s32.totalorder %s395_s1, %s264_s28  ;;  %p268_p9 = scmp.lt.u32.totalorder %s264_s28, %s395_s1 }
  0x16   :  { %p270_p10 = pnand %p268_p9, %p265_p8 }
  0x18   :  { %273 = shalt.err (!%p270_p10)
}
  0x19   :  { %s274_s6 = scalar_lea.vmem %s342_s15, 512  ;;  %p279_p12 = scmp.lt.s32.totalorder %s342_s15, %s342_s15 }
  0x1a   :  { %p275_p11 = scmp.ne.s32.totalorder %s342_s15, %s274_s6  ;;  %p280_p13 = scmp.lt.s32.totalorder %s274_s6, %s274_s6 }
  0x1c   :  { %p281_p0 = por %p280_p13, %p279_p12 }
  0x1e   :  { %p282_p1 = pnand %p281_p0, %p275_p11 }
  0x20   :  { %285 = shalt.err (!%p282_p1)
}
  0x21   :  { %s316_s0 = smov 128   ;;  %s317_s7 = smov 8  }
  0x22   :  { %32 = dma.hbm_to_vmem [thread:$0]  %s395_s1, 512, %s342_s15, [#allocation6], %s316_s0, %s316_s0, %s317_s7  }
  0x23   :  { %308 = dma.done.wait [#allocation3], 128  }
  0x24   :  { %309 = vsyncadd [#allocation3], 4294967168 }
  0x25   :  { %310 = dma.done.wait [#allocation6], 512  }
  0x26   :  { %311 = vsyncadd [#allocation6], 4294966784  ;;  %v318_v0 = vmov 0.0|0.0   ;;  %vm319_vm0 = vmmov 0   ;;  %v320_v1 = vmov 0.0   ;;  %vm53_vm1 = vcmask 261120  }
  0x27   :  { %220 = vmatprep.subr.bf16.mxu0 %v318_v0  ;;  %217 = vmatprep.mubr.msk.f32.mxu0 %vm319_vm0, %v320_v1  ;;  %v42_v2 = vld [vmem:[#allocation5] sm:$0xff]  ;;  %v43_v3 = vld [vmem:[#allocation5 + $0x8] sm:$0xff]  ;;  %vm222_vm2 = vmpackc.low %vm53_vm1, %vm53_vm1  ;;  %vm156_vm3 = vcmask 1040384   ;;  %vm158_vm4 = vcmask 254976   ;;  %v168_v40 = vlaneseq }
  0x28   :  { %v221_v4 = vpack.c.bf16 %v43_v3, %v42_v2  ;;  %v44_v5 = vld [vmem:[#allocation5 + $0x10] sm:$0xff]  ;;  %v45_v6 = vld [vmem:[#allocation5 + $0x18] sm:$0xff] }
  0x29   :  { %v225_v7 = vpack.c.bf16 %v45_v6, %v44_v5  ;;  %v41_v8 = vld [vmem:[#allocation2] sm:$0xff]  ;;  %v169_v41 = vshrl.u32 %v168_v40, 7 }
  0x2a   :  { %223 = vmatpush3.bf16.xpose.msk.msra.mxu0 %vm222_vm2, %v221_v4  ;;  %v198_v9 = vld [vmem:[%s396_s2] ss:$0 sm:$0xff]  ;;  %s321_s2 = smov [#allocation7]  }
  0x2b   :  { %224 = vmatprep.subr.bf16.mxu0 %v318_v0  ;;  %v170_v42 = vsub.s32 0, %v169_v41  ;;  %s188_s11 = sshll.u32 %s321_s2, 4  ;;  %s189_s11 = int_to_ptr.vmem [resolvable:$true] %s188_s11 }
  0x2c   :  { %s286_s13 = scalar_lea.vmem %s189_s11, 128  ;;  %p291_p3 = scmp.lt.s32.totalorder %s189_s11, %s189_s11 }
  0x2d   :  { %p287_p2 = scmp.ne.s32.totalorder %s189_s11, %s286_s13  ;;  %p292_p4 = scmp.lt.s32.totalorder %s286_s13, %s286_s13 }
  0x2f   :  { %p293_p5 = por %p292_p4, %p291_p3 }
  0x31   :  { %p294_p6 = pnand %p293_p5, %p287_p2 }
  0x32   :  { %227 = vmatpush3.bf16.xpose.msk.msra.mxu0 %vm222_vm2, %v225_v7 }
  0x39   :  { %218 = vmatmul.mubr.msk.f32.vlgmr.msra.gmra.mrb[0].mxu0 %vm53_vm1, %v41_v8 }
 0x10c   :  { %v135_v10 = vpop.f32.mrb[0].mxu0 }
 0x10d   :  { %v136_v11 = vadd.f32 %v198_v9, %v135_v10  ;;  %v219_v12 = vpop.f32.mrb[1].mxu0 }
 0x10f   :  { %v139_v13 = vadd.f32 %v136_v11, %v41_v8 }
 0x111   :  { %238 = vtanh.f32 %v139_v13 }
 0x11b   :  { %v239_v14 = vpop.eup %238 }
 0x11c   :  { %v141_v15 = vsel %vm53_vm1, %v239_v14, 0.0  ;;  %v148_v16 = vmul.f32 %v239_v14, %v239_v14 }
 0x11d   :  { %v142_v17 = vrot.slane %v141_v15, 4 }
 0x11e   :  { %v149_v18 = vsel %vm53_vm1, %v148_v16, 0.0 }
 0x11f   :  { %v143_v19 = vadd.f32 %v142_v17, %v141_v15  ;;  %v150_v20 = vrot.slane %v149_v18, 4 }
 0x121   :  { %v144_v21 = vrot.slane %v143_v19, 2  ;;  %v151_v22 = vadd.f32 %v150_v20, %v149_v18 }
 0x123   :  { %v145_v23 = vadd.f32 %v144_v21, %v143_v19  ;;  %v152_v24 = vrot.slane %v151_v22, 2 }
 0x125   :  { %v146_v25 = vrot.slane %v145_v23, 1  ;;  %v153_v26 = vadd.f32 %v152_v24, %v151_v22 }
 0x127   :  { %v154_v27 = vrot.slane %v153_v26, 1  ;;  %v147_v28 = vadd.f32 %v146_v25, %v145_v23 }
 0x129   :  { %v155_v29 = vadd.f32 %v154_v27, %v153_v26 }
 0x12b   :  { %v157_v30 = vsel %vm156_vm3, %v147_v28, %v155_v29 }
 0x12c   :  { %v159_v31 = vsel %vm158_vm4, %v157_v30, 0.0 }
 0x12d   :  { %160 = vadd.xlane.f32.xlu0 %v159_v31 }
 0x1ba   :  { %v161_v32 = vpop.xlane.xlu0 %160 }
 0x1bb   :  { %v162_v33 = vmul.f32 0.00390625, %v161_v32 }
 0x1bd   :  { %v163_v34 = vmul.f32 %v162_v33, %v162_v33  ;;  %v171_v43 = vrot.slane %v162_v33, %v170_v42 }
 0x1bf   :  { %v165_v35 = vrot.slane %v163_v34, 7  ;;  %v172_v44 = vsub.f32 %v239_v14, %v171_v43 }
 0x1c1   :  { %v167_v36 = vsub.f32 %v162_v33, %v165_v35 }
 0x1c3   :  { %v173_v37 = vadd.f32 1e-05, %v167_v36 }
 0x1c5   :  { %240 = vrsqrt.f32 %v173_v37 }
 0x1cf   :  { %v241_v38 = vpop.eup %240 }
 0x1d0   :  { %v176_v39 = vrot.slane %v241_v38, 1 }
 0x1d2   :  { %228 = vpush %v176_v39 }
 0x203   :  { %s229_s12 = spop %228 }
 0x204   :  { %v178_v45 = vstv %s229_s12 }
 0x205   :  { %v180_v46 = vmul.f32 %v178_v45, %v172_v44 }
 0x207   :  { %181 = vst.msk [vmem:[#allocation7] sm:$0xff] %vm53_vm1, %v180_v46 }
 0x208   :  { %297 = shalt.err (!%p294_p6)
}
 0x209   :  { %s298_s16 = scalar_lea.hbm %s397_s3, 128 }
 0x20a   :  { %p299_p7 = scmp.ne.s32.totalorder %s397_s3, %s298_s16  ;;  %p302_p8 = scmp.lt.u32.totalorder %s298_s16, %s397_s3 }
 0x20c   :  { %p304_p9 = pnand %p302_p8, %p299_p7 }
 0x20e   :  { %307 = shalt.err (!%p304_p9)
}
 0x20f   :  { %191 = dma.vmem_to_hbm [thread:$0]  %s189_s11, 128, %s397_s3, [#allocation4]  }
 0x210   :  { %312 = dma.done.wait [#allocation4], 128  }
 0x211   :  { %313 = vsyncadd [#allocation4], 4294967168 }
 0x212   :  { %195 = vsyncpa [#allocation3], 1 }
 0x213   :  { %196 = vsyncpa [#allocation6], 1 }
 0x214   :  { %197 = vsyncpa [#allocation4], 1 }

</bundles_post_ra>
